<compile_context>
chip_gen: v7x
topology: tpu7x:2x2x1
jax: 0.10.0
libtpu: 0.0.40
codegen_flags: <defaults>
</compile_context>

<pallas_src>
import jax
import jax.numpy as jnp
from jax import lax
from jax.experimental import pallas as pl
from jax.experimental.pallas import tpu as pltpu

# ---------------- configuration (small, TPU-aligned shapes) ----------------
N_BATCH   = 2        # batch
C_IN      = 16       # in_channels  (B in ConvTasNet)
C_HID     = 32       # conv_channels (H)
T_LEN     = 128      # time steps (lane-aligned)
P_KSIZE   = 3        # depthwise kernel size (P) — odd for 'same' padding
DILATION  = 1
EPS       = 1e-5
DCONV_PAD = DILATION * (P_KSIZE - 1) // 2    # non-causal 'same' padding
NT        = N_BATCH * T_LEN

# bf16 on the MXU boundary only (elementwise stays f32).  Set to jnp.float32
# for strict parity with the f32 PyTorch reference.
MXU_DTYPE = jnp.bfloat16

assert P_KSIZE % 2 == 1, "symmetric 'same' padding requires an odd kernel size"
assert DCONV_PAD < T_LEN, "dilation*(P-1)/2 must be < T for the roll/mask taps"
assert T_LEN % 128 == 0, "per-sample segments must be vreg(128)-lane aligned"


# ------------------------------- kernel ------------------------------------
def conv1d_block_kernel(x_ref,      # (C_IN, N*T)        VMEM  (batch folded into lanes)
                        w1_ref,     # (C_HID, C_IN)      VMEM
                        w3b_ref,    # (C_IN, C_HID + 1)  VMEM  [w3 | b3]
                        hidp_ref,   # (C_HID, 6 + P)     VMEM  [b1 g1 be1 wd.. bd g2 be2]
                        a_ref,      # (2,)               SMEM  [prelu1, prelu2]
                        o_ref):     # (C_IN, N*T)        VMEM
    # ---- unpack packed parameters once (single loads, no batch loop) ----
    hidp = hidp_ref[...]
    b1  = hidp[:, 0:1]
    g1  = hidp[:, 1:2]
    be1 = hidp[:, 2:3]
    wd_cols = [hidp[:, 3 + k:4 + k] for k in range(P_KSIZE)]
    bd  = hidp[:, 3 + P_KSIZE:4 + P_KSIZE]
    g2  = hidp[:, 4 + P_KSIZE:5 + P_KSIZE]
    be2 = hidp[:, 5 + P_KSIZE:6 + P_KSIZE]

    w1 = w1_ref[...].astype(MXU_DTYPE)
    w3 = w3b_ref[:, :C_HID].astype(MXU_DTYPE)
    b3 = w3b_ref[:, C_HID:C_HID + 1]

    a1 = a_ref[0]                     # PReLU slopes via the scalar path
    a2 = a_ref[1]

    # hoisted lane indices shared by gLN plane-building and depthwise masks
    lane_idx = lax.broadcasted_iota(jnp.int32, (C_HID, NT), 1)
    lane_mod = lane_idx % T_LEN

    inv_cnt = 1.0 / (C_HID * T_LEN)

    def prelu(y, alpha):
        return jnp.where(y >= 0, y, alpha * y)

    def gln(y, g, be):
        # Per-sample global layer norm over each 128-lane segment.
        # Stats: fused sum / sum-of-squares on static vreg-aligned slices.
        # Apply: affine folded into per-sample (C,1) scale/shift, selected
        # into (C, N*T) planes -> bulk tile work is one mul + one add.
        scales, shifts = [], []
        for n in range(N_BATCH):
            seg = y[:, n * T_LEN:(n + 1) * T_LEN]
            s  = jnp.sum(seg)
            ss = jnp.sum(seg * seg)
            m  = s * inv_cnt
            v  = jnp.maximum(ss * inv_cnt - m * m, 0.0)
            r  = lax.rsqrt(v + EPS)              # EUP
            sc = g * r                            # (C_HID, 1)
            scales.append(sc)
            shifts.append(be - m * sc)            # (C_HID, 1)
        scale_plane = scales[0]
        shift_plane = shifts[0]
        for n in range(1, N_BATCH):
            in_n = lane_idx >= n * T_LEN
            scale_plane = jnp.where(in_n, scales[n], scale_plane)
            shift_plane = jnp.where(in_n, shifts[n], shift_plane)
        return y * scale_plane + shift_plane

    x = x_ref[...]                                # (C_IN, N*T), f32

    # conv1x1: pointwise conv == one channel matmul on the MXU (bf16 in, f32 acc)
    y = jnp.dot(w1, x.astype(MXU_DTYPE),
                preferred_element_type=jnp.float32) + b1          # (C_HID, N*T)

    y = gln(prelu(y, a1), g1, be1)

    # depthwise dilated conv: center tap + bias seeds the accumulator, other
    # taps via XLU roll over the folded lane axis + lane%T edge masks.
    # NOTE: pltpu.roll follows jnp.roll semantics (out[t] = y[t - shift]); taps
    # rolled across the sample boundary / array edge are zeroed by the mask,
    # matching the zero 'same' padding of nn.Conv1d.
    center = P_KSIZE // 2
    acc = wd_cols[center] * y + bd
    for k in range(P_KSIZE):
        if k == center:
            continue
        off = k * DILATION - DCONV_PAD           # this tap reads y[t + off]
        shift = (-off) % NT
        if off < 0:
            mask = lane_mod >= -off
        else:
            mask = lane_mod < T_LEN - off
        acc = acc + wd_cols[k] * jnp.where(mask, pltpu.roll(y, shift, 1), 0.0)
    y = acc

    y = gln(prelu(y, a2), g2, be2)

    # sconv: pointwise conv back to in_channels (one MXU matmul) + residual
    out = jnp.dot(w3, y.astype(MXU_DTYPE),
                  preferred_element_type=jnp.float32) + b3        # (C_IN, N*T)
    o_ref[...] = x + out                                          # lane-dense store


# ------------------------------ wrapper -------------------------------------
def pack_params(params):
    """Pack the 12 PyTorch-shaped parameters into 3 VMEM slabs + SMEM scalars."""
    (w1, b1, a1, g1, be1, wd, bd, a2, g2, be2, w3, b3) = params
    hidp = jnp.concatenate([b1, g1, be1, wd, bd, g2, be2], axis=1)  # (C_HID, 6+P)
    w3b  = jnp.concatenate([w3, b3], axis=1)                        # (C_IN, C_HID+1)
    alphas = jnp.stack([a1[0, 0], a2[0, 0]]).astype(jnp.float32)    # (2,)
    return w1, w3b, hidp, alphas


@jax.jit
def conv1d_block(x, w1, w3b, hidp, alphas):
    n, c, t = x.shape
    # layout plumbing only: fold batch into the lane axis -> (C_IN, N*T)
    x2 = jnp.transpose(x, (1, 0, 2)).reshape(c, n * t)
    out2 = pl.pallas_call(
        conv1d_block_kernel,
        out_shape=jax.ShapeDtypeStruct((c, n * t), x.dtype),
        in_specs=[
            pl.BlockSpec(memory_space=pltpu.MemorySpace.VMEM),   # x (C_IN, N*T)
            pl.BlockSpec(memory_space=pltpu.MemorySpace.VMEM),   # w1
            pl.BlockSpec(memory_space=pltpu.MemorySpace.VMEM),   # [w3 | b3]
            pl.BlockSpec(memory_space=pltpu.MemorySpace.VMEM),   # packed hid params
            pl.BlockSpec(memory_space=pltpu.MemorySpace.SMEM),   # PReLU alphas
        ],
        out_specs=pl.BlockSpec(memory_space=pltpu.MemorySpace.VMEM),
    )(x2, w1, w3b, hidp, alphas)
    return jnp.transpose(out2.reshape(c, n, t), (1, 0, 2))


# --------------------------- pure-JAX reference ------------------------------
def reference(x, params):
    (w1, b1, a1, g1, be1, wd, bd, a2, g2, be2, w3, b3) = params

    def gln(y, g, be):
        m = jnp.mean(y, axis=(1, 2), keepdims=True)
        v = jnp.mean((y - m) ** 2, axis=(1, 2), keepdims=True)
        return g[None] * (y - m) / jnp.sqrt(v + EPS) + be[None]

    def prelu(y, a):
        return jnp.where(y >= 0, y, a[0, 0] * y)

    y = jnp.einsum('hc,nct->nht', w1, x) + b1[None]
    y = gln(prelu(y, a1), g1, be1)
    ypad = jnp.pad(y, ((0, 0), (0, 0), (DCONV_PAD, DCONV_PAD)))
    acc = jnp.broadcast_to(bd[None], y.shape)
    for k in range(P_KSIZE):
        acc = acc + wd[None, :, k:k + 1] * ypad[:, :, k * DILATION:k * DILATION + T_LEN]
    y = gln(prelu(acc, a2), g2, be2)
    out = jnp.einsum('ch,nht->nct', w3, y) + b3[None]
    return x + out


# --------------------------------- main --------------------------------------
if __name__ == "__main__":
    key = jax.random.PRNGKey(0)
    ks = jax.random.split(key, 16)

    x = jax.random.normal(ks[0], (N_BATCH, C_IN, T_LEN), jnp.float32)

    # deterministic synthetic parameters (shapes match nn.Module __init__)
    w1 = jax.random.normal(ks[1], (C_HID, C_IN), jnp.float32) * 0.1
    b1 = jax.random.normal(ks[2], (C_HID, 1), jnp.float32) * 0.1
    a1 = jnp.full((1, 1), 0.25, jnp.float32)                    # nn.PReLU default
    g1 = 1.0 + 0.1 * jax.random.normal(ks[3], (C_HID, 1), jnp.float32)
    be1 = 0.1 * jax.random.normal(ks[4], (C_HID, 1), jnp.float32)
    wd = jax.random.normal(ks[5], (C_HID, P_KSIZE), jnp.float32) * 0.1
    bd = jax.random.normal(ks[6], (C_HID, 1), jnp.float32) * 0.1
    a2 = jnp.full((1, 1), 0.25, jnp.float32)
    g2 = 1.0 + 0.1 * jax.random.normal(ks[7], (C_HID, 1), jnp.float32)
    be2 = 0.1 * jax.random.normal(ks[8], (C_HID, 1), jnp.float32)
    w3 = jax.random.normal(ks[9], (C_IN, C_HID), jnp.float32) * 0.1
    b3 = jax.random.normal(ks[10], (C_IN, 1), jnp.float32) * 0.1

    params = (w1, b1, a1, g1, be1, wd, bd, a2, g2, be2, w3, b3)
    w1_p, w3b_p, hidp_p, alphas_p = pack_params(params)

    out = conv1d_block(x, w1_p, w3b_p, hidp_p, alphas_p)
    out = jax.block_until_ready(out)

    ref = reference(x, params)
    assert out.shape == x.shape
    # strict parity only holds with f32 MXU operands; bf16 routing trades a
    # little precision for 3x+ MXU rate on v6e/v7x (and native rate on v5e).
    tol = 2e-4 if MXU_DTYPE == jnp.float32 else 5e-2
    assert jnp.allclose(out, ref, atol=tol, rtol=tol), "mismatch vs JAX reference"

    print("KERNEL_OK")
</pallas_src>

<mosaic_0001>
module attributes {stable_mosaic.version = 11 : i64} {
  func.func @conv1d_block_kernel(%arg0: memref<16x256xf32, #tpu.memory_space<vmem>>, %arg1: memref<32x16xf32, #tpu.memory_space<vmem>>, %arg2: memref<16x33xf32, #tpu.memory_space<vmem>>, %arg3: memref<32x9xf32, #tpu.memory_space<vmem>>, %arg4: memref<2xf32, #tpu.memory_space<smem>>, %arg5: memref<16x256xf32, #tpu.memory_space<vmem>>) attributes {dimension_semantics = [], scalar_prefetch = 0 : i64, scratch_operands = 0 : i64, tpu.core_type = #tpu.core_type<tc>} {
    %c0 = arith.constant 0 : index
    %c0_0 = arith.constant 0 : index
    %0 = vector.load %arg3[%c0, %c0_0] : memref<32x9xf32, #tpu.memory_space<vmem>>, vector<32x9xf32>
    %1 = vector.extract_strided_slice %0 {offsets = [0, 0], sizes = [32, 1], strides = [1, 1]} : vector<32x9xf32> to vector<32x1xf32>
    %2 = vector.extract_strided_slice %0 {offsets = [0, 1], sizes = [32, 1], strides = [1, 1]} : vector<32x9xf32> to vector<32x1xf32>
    %3 = vector.extract_strided_slice %0 {offsets = [0, 2], sizes = [32, 1], strides = [1, 1]} : vector<32x9xf32> to vector<32x1xf32>
    %4 = vector.extract_strided_slice %0 {offsets = [0, 3], sizes = [32, 1], strides = [1, 1]} : vector<32x9xf32> to vector<32x1xf32>
    %5 = vector.extract_strided_slice %0 {offsets = [0, 4], sizes = [32, 1], strides = [1, 1]} : vector<32x9xf32> to vector<32x1xf32>
    %6 = vector.extract_strided_slice %0 {offsets = [0, 5], sizes = [32, 1], strides = [1, 1]} : vector<32x9xf32> to vector<32x1xf32>
    %7 = vector.extract_strided_slice %0 {offsets = [0, 6], sizes = [32, 1], strides = [1, 1]} : vector<32x9xf32> to vector<32x1xf32>
    %8 = vector.extract_strided_slice %0 {offsets = [0, 7], sizes = [32, 1], strides = [1, 1]} : vector<32x9xf32> to vector<32x1xf32>
    %9 = vector.extract_strided_slice %0 {offsets = [0, 8], sizes = [32, 1], strides = [1, 1]} : vector<32x9xf32> to vector<32x1xf32>
    %c0_1 = arith.constant 0 : index
    %c0_2 = arith.constant 0 : index
    %10 = vector.load %arg1[%c0_1, %c0_2] : memref<32x16xf32, #tpu.memory_space<vmem>>, vector<32x16xf32>
    %11 = arith.truncf %10 : vector<32x16xf32> to vector<32x16xbf16>
    %c0_3 = arith.constant 0 : index
    %c0_4 = arith.constant 0 : index
    %12 = vector.load %arg2[%c0_3, %c0_4] : memref<16x33xf32, #tpu.memory_space<vmem>>, vector<16x32xf32>
    %13 = arith.truncf %12 : vector<16x32xf32> to vector<16x32xbf16>
    %c0_5 = arith.constant 0 : index
    %c32 = arith.constant 32 : index
    %14 = vector.load %arg2[%c0_5, %c32] : memref<16x33xf32, #tpu.memory_space<vmem>>, vector<16x1xf32>
    %c0_6 = arith.constant 0 : index
    %15 = memref.load %arg4[%c0_6] : memref<2xf32, #tpu.memory_space<smem>>
    %c1 = arith.constant 1 : index
    %16 = memref.load %arg4[%c1] : memref<2xf32, #tpu.memory_space<smem>>
    %17 = tpu.iota {dimensions = array<i32: 1>} : vector<32x256xi32>
    %c128_i32 = arith.constant 128 : i32
    %c0_i32 = arith.constant 0 : i32
    %18 = arith.cmpi eq, %c128_i32, %c0_i32 : i32
    %c1_i32 = arith.constant 1 : i32
    %19 = arith.select %18, %c1_i32, %c128_i32 : i32
    %20 = vector.broadcast %19 : i32 to vector<32x256xi32>
    %21 = arith.remsi %17, %20 : vector<32x256xi32>
    %c0_i32_7 = arith.constant 0 : i32
    %22 = vector.broadcast %c0_i32_7 : i32 to vector<32x256xi32>
    %23 = arith.cmpi ne, %21, %22 : vector<32x256xi32>
    %c0_i32_8 = arith.constant 0 : i32
    %24 = vector.broadcast %c0_i32_8 : i32 to vector<32x256xi32>
    %25 = arith.cmpi slt, %21, %24 : vector<32x256xi32>
    %c0_i32_9 = arith.constant 0 : i32
    %26 = arith.cmpi slt, %19, %c0_i32_9 : i32
    %27 = vector.broadcast %26 : i1 to vector<32x256xi1>
    %28 = vector.broadcast %27 : vector<32x256xi1> to vector<32x256xi1>
    %29 = arith.xori %25, %28 : vector<32x256xi1>
    %30 = arith.andi %29, %23 : vector<32x256xi1>
    %31 = vector.broadcast %19 : i32 to vector<32x256xi32>
    %32 = arith.addi %21, %31 : vector<32x256xi32>
    %33 = arith.select %30, %32, %21 : vector<32x256xi1>, vector<32x256xi32>
    %c0_10 = arith.constant 0 : index
    %c0_11 = arith.constant 0 : index
    %34 = vector.load %arg0[%c0_10, %c0_11] : memref<16x256xf32, #tpu.memory_space<vmem>>, vector<16x256xf32>
    %35 = arith.truncf %34 : vector<16x256xf32> to vector<16x256xbf16>
    %cst = arith.constant dense<0.000000e+00> : vector<32x256xf32>
    %36 = tpu.matmul %11, %35, %cst {dimension_numbers = #tpu.dot_dimension_numbers<[1], [0], [0], [1], [0, 0, 1, 1], [], []>} : vector<32x16xbf16>, vector<16x256xbf16>, vector<32x256xf32> -> vector<32x256xf32>
    %37 = vector.broadcast %1 : vector<32x1xf32> to vector<32x256xf32>
    %38 = arith.addf %36, %37 : vector<32x256xf32>
    %cst_12 = arith.constant 0.000000e+00 : f32
    %39 = vector.broadcast %cst_12 : f32 to vector<32x256xf32>
    %40 = arith.cmpf oge, %38, %39 : vector<32x256xf32>
    %41 = vector.broadcast %15 : f32 to vector<32x256xf32>
    %42 = arith.mulf %41, %38 : vector<32x256xf32>
    %43 = arith.select %40, %38, %42 : vector<32x256xi1>, vector<32x256xf32>
    %44 = vector.extract_strided_slice %43 {offsets = [0, 0], sizes = [32, 128], strides = [1, 1]} : vector<32x256xf32> to vector<32x128xf32>
    %45 = vector.shape_cast %44 : vector<32x128xf32> to vector<1x32x128xf32>
    %cst_13 = arith.constant dense<0.000000e+00> : vector<1xf32>
    %46 = vector.multi_reduction <add>, %45, %cst_13 [1, 2] : vector<1x32x128xf32> to vector<1xf32>
    %47 = vector.shape_cast %46 : vector<1xf32> to vector<1x1x1xf32>
    %48 = vector.extract %47[0, 0, 0] : f32 from vector<1x1x1xf32>
    %49 = arith.mulf %44, %44 : vector<32x128xf32>
    %50 = vector.shape_cast %49 : vector<32x128xf32> to vector<1x32x128xf32>
    %cst_14 = arith.constant dense<0.000000e+00> : vector<1xf32>
    %51 = vector.multi_reduction <add>, %50, %cst_14 [1, 2] : vector<1x32x128xf32> to vector<1xf32>
    %52 = vector.shape_cast %51 : vector<1xf32> to vector<1x1x1xf32>
    %53 = vector.extract %52[0, 0, 0] : f32 from vector<1x1x1xf32>
    %cst_15 = arith.constant 2.44140625E-4 : f32
    %54 = arith.mulf %48, %cst_15 : f32
    %cst_16 = arith.constant 2.44140625E-4 : f32
    %55 = arith.mulf %53, %cst_16 : f32
    %56 = arith.mulf %54, %54 : f32
    %57 = arith.subf %55, %56 : f32
    %cst_17 = arith.constant 0.000000e+00 : f32
    %58 = arith.maximumf %57, %cst_17 : f32
    %cst_18 = arith.constant 9.99999974E-6 : f32
    %59 = arith.addf %58, %cst_18 : f32
    %60 = math.rsqrt %59 : f32
    %61 = vector.broadcast %60 : f32 to vector<32x1xf32>
    %62 = arith.mulf %2, %61 : vector<32x1xf32>
    %63 = vector.broadcast %54 : f32 to vector<32x1xf32>
    %64 = arith.mulf %63, %62 : vector<32x1xf32>
    %65 = arith.subf %3, %64 : vector<32x1xf32>
    %66 = vector.extract_strided_slice %43 {offsets = [0, 128], sizes = [32, 128], strides = [1, 1]} : vector<32x256xf32> to vector<32x128xf32>
    %67 = vector.shape_cast %66 : vector<32x128xf32> to vector<1x32x128xf32>
    %cst_19 = arith.constant dense<0.000000e+00> : vector<1xf32>
    %68 = vector.multi_reduction <add>, %67, %cst_19 [1, 2] : vector<1x32x128xf32> to vector<1xf32>
    %69 = vector.shape_cast %68 : vector<1xf32> to vector<1x1x1xf32>
    %70 = vector.extract %69[0, 0, 0] : f32 from vector<1x1x1xf32>
    %71 = arith.mulf %66, %66 : vector<32x128xf32>
    %72 = vector.shape_cast %71 : vector<32x128xf32> to vector<1x32x128xf32>
    %cst_20 = arith.constant dense<0.000000e+00> : vector<1xf32>
    %73 = vector.multi_reduction <add>, %72, %cst_20 [1, 2] : vector<1x32x128xf32> to vector<1xf32>
    %74 = vector.shape_cast %73 : vector<1xf32> to vector<1x1x1xf32>
    %75 = vector.extract %74[0, 0, 0] : f32 from vector<1x1x1xf32>
    %cst_21 = arith.constant 2.44140625E-4 : f32
    %76 = arith.mulf %70, %cst_21 : f32
    %cst_22 = arith.constant 2.44140625E-4 : f32
    %77 = arith.mulf %75, %cst_22 : f32
    %78 = arith.mulf %76, %76 : f32
    %79 = arith.subf %77, %78 : f32
    %cst_23 = arith.constant 0.000000e+00 : f32
    %80 = arith.maximumf %79, %cst_23 : f32
    %cst_24 = arith.constant 9.99999974E-6 : f32
    %81 = arith.addf %80, %cst_24 : f32
    %82 = math.rsqrt %81 : f32
    %83 = vector.broadcast %82 : f32 to vector<32x1xf32>
    %84 = arith.mulf %2, %83 : vector<32x1xf32>
    %85 = vector.broadcast %76 : f32 to vector<32x1xf32>
    %86 = arith.mulf %85, %84 : vector<32x1xf32>
    %87 = arith.subf %3, %86 : vector<32x1xf32>
    %c128_i32_25 = arith.constant 128 : i32
    %88 = vector.broadcast %c128_i32_25 : i32 to vector<32x256xi32>
    %89 = arith.cmpi sge, %17, %88 : vector<32x256xi32>
    %90 = vector.shape_cast %84 : vector<32x1xf32> to vector<32x1xf32>
    %91 = vector.broadcast %90 : vector<32x1xf32> to vector<32x256xf32>
    %92 = vector.shape_cast %62 : vector<32x1xf32> to vector<32x1xf32>
    %93 = vector.broadcast %92 : vector<32x1xf32> to vector<32x256xf32>
    %94 = arith.select %89, %91, %93 : vector<32x256xi1>, vector<32x256xf32>
    %95 = vector.shape_cast %87 : vector<32x1xf32> to vector<32x1xf32>
    %96 = vector.broadcast %95 : vector<32x1xf32> to vector<32x256xf32>
    %97 = vector.shape_cast %65 : vector<32x1xf32> to vector<32x1xf32>
    %98 = vector.broadcast %97 : vector<32x1xf32> to vector<32x256xf32>
    %99 = arith.select %89, %96, %98 : vector<32x256xi1>, vector<32x256xf32>
    %100 = arith.mulf %43, %94 : vector<32x256xf32>
    %101 = arith.addf %100, %99 : vector<32x256xf32>
    %102 = vector.broadcast %5 : vector<32x1xf32> to vector<32x256xf32>
    %103 = arith.mulf %102, %101 : vector<32x256xf32>
    %104 = vector.broadcast %7 : vector<32x1xf32> to vector<32x256xf32>
    %105 = arith.addf %103, %104 : vector<32x256xf32>
    %c1_i32_26 = arith.constant 1 : i32
    %106 = vector.broadcast %c1_i32_26 : i32 to vector<32x256xi32>
    %107 = arith.cmpi sge, %33, %106 : vector<32x256xi32>
    %c1_i32_27 = arith.constant 1 : i32
    %108 = tpu.dynamic_rotate %101 by %c1_i32_27 dim 1 : vector<32x256xf32>, i32 -> vector<32x256xf32>
    %cst_28 = arith.constant 0.000000e+00 : f32
    %109 = vector.broadcast %cst_28 : f32 to vector<32x256xf32>
    %110 = arith.select %107, %108, %109 : vector<32x256xi1>, vector<32x256xf32>
    %111 = vector.broadcast %4 : vector<32x1xf32> to vector<32x256xf32>
    %112 = arith.mulf %111, %110 : vector<32x256xf32>
    %113 = arith.addf %105, %112 : vector<32x256xf32>
    %c127_i32 = arith.constant 127 : i32
    %114 = vector.broadcast %c127_i32 : i32 to vector<32x256xi32>
    %115 = arith.cmpi slt, %33, %114 : vector<32x256xi32>
    %c255_i32 = arith.constant 255 : i32
    %116 = tpu.dynamic_rotate %101 by %c255_i32 dim 1 : vector<32x256xf32>, i32 -> vector<32x256xf32>
    %cst_29 = arith.constant 0.000000e+00 : f32
    %117 = vector.broadcast %cst_29 : f32 to vector<32x256xf32>
    %118 = arith.select %115, %116, %117 : vector<32x256xi1>, vector<32x256xf32>
    %119 = vector.broadcast %6 : vector<32x1xf32> to vector<32x256xf32>
    %120 = arith.mulf %119, %118 : vector<32x256xf32>
    %121 = arith.addf %113, %120 : vector<32x256xf32>
    %cst_30 = arith.constant 0.000000e+00 : f32
    %122 = vector.broadcast %cst_30 : f32 to vector<32x256xf32>
    %123 = arith.cmpf oge, %121, %122 : vector<32x256xf32>
    %124 = vector.broadcast %16 : f32 to vector<32x256xf32>
    %125 = arith.mulf %124, %121 : vector<32x256xf32>
    %126 = arith.select %123, %121, %125 : vector<32x256xi1>, vector<32x256xf32>
    %127 = vector.extract_strided_slice %126 {offsets = [0, 0], sizes = [32, 128], strides = [1, 1]} : vector<32x256xf32> to vector<32x128xf32>
    %128 = vector.shape_cast %127 : vector<32x128xf32> to vector<1x32x128xf32>
    %cst_31 = arith.constant dense<0.000000e+00> : vector<1xf32>
    %129 = vector.multi_reduction <add>, %128, %cst_31 [1, 2] : vector<1x32x128xf32> to vector<1xf32>
    %130 = vector.shape_cast %129 : vector<1xf32> to vector<1x1x1xf32>
    %131 = vector.extract %130[0, 0, 0] : f32 from vector<1x1x1xf32>
    %132 = arith.mulf %127, %127 : vector<32x128xf32>
    %133 = vector.shape_cast %132 : vector<32x128xf32> to vector<1x32x128xf32>
    %cst_32 = arith.constant dense<0.000000e+00> : vector<1xf32>
    %134 = vector.multi_reduction <add>, %133, %cst_32 [1, 2] : vector<1x32x128xf32> to vector<1xf32>
    %135 = vector.shape_cast %134 : vector<1xf32> to vector<1x1x1xf32>
    %136 = vector.extract %135[0, 0, 0] : f32 from vector<1x1x1xf32>
    %cst_33 = arith.constant 2.44140625E-4 : f32
    %137 = arith.mulf %131, %cst_33 : f32
    %cst_34 = arith.constant 2.44140625E-4 : f32
    %138 = arith.mulf %136, %cst_34 : f32
    %139 = arith.mulf %137, %137 : f32
    %140 = arith.subf %138, %139 : f32
    %cst_35 = arith.constant 0.000000e+00 : f32
    %141 = arith.maximumf %140, %cst_35 : f32
    %cst_36 = arith.constant 9.99999974E-6 : f32
    %142 = arith.addf %141, %cst_36 : f32
    %143 = math.rsqrt %142 : f32
    %144 = vector.broadcast %143 : f32 to vector<32x1xf32>
    %145 = arith.mulf %8, %144 : vector<32x1xf32>
    %146 = vector.broadcast %137 : f32 to vector<32x1xf32>
    %147 = arith.mulf %146, %145 : vector<32x1xf32>
    %148 = arith.subf %9, %147 : vector<32x1xf32>
    %149 = vector.extract_strided_slice %126 {offsets = [0, 128], sizes = [32, 128], strides = [1, 1]} : vector<32x256xf32> to vector<32x128xf32>
    %150 = vector.shape_cast %149 : vector<32x128xf32> to vector<1x32x128xf32>
    %cst_37 = arith.constant dense<0.000000e+00> : vector<1xf32>
    %151 = vector.multi_reduction <add>, %150, %cst_37 [1, 2] : vector<1x32x128xf32> to vector<1xf32>
    %152 = vector.shape_cast %151 : vector<1xf32> to vector<1x1x1xf32>
    %153 = vector.extract %152[0, 0, 0] : f32 from vector<1x1x1xf32>
    %154 = arith.mulf %149, %149 : vector<32x128xf32>
    %155 = vector.shape_cast %154 : vector<32x128xf32> to vector<1x32x128xf32>
    %cst_38 = arith.constant dense<0.000000e+00> : vector<1xf32>
    %156 = vector.multi_reduction <add>, %155, %cst_38 [1, 2] : vector<1x32x128xf32> to vector<1xf32>
    %157 = vector.shape_cast %156 : vector<1xf32> to vector<1x1x1xf32>
    %158 = vector.extract %157[0, 0, 0] : f32 from vector<1x1x1xf32>
    %cst_39 = arith.constant 2.44140625E-4 : f32
    %159 = arith.mulf %153, %cst_39 : f32
    %cst_40 = arith.constant 2.44140625E-4 : f32
    %160 = arith.mulf %158, %cst_40 : f32
    %161 = arith.mulf %159, %159 : f32
    %162 = arith.subf %160, %161 : f32
    %cst_41 = arith.constant 0.000000e+00 : f32
    %163 = arith.maximumf %162, %cst_41 : f32
    %cst_42 = arith.constant 9.99999974E-6 : f32
    %164 = arith.addf %163, %cst_42 : f32
    %165 = math.rsqrt %164 : f32
    %166 = vector.broadcast %165 : f32 to vector<32x1xf32>
    %167 = arith.mulf %8, %166 : vector<32x1xf32>
    %168 = vector.broadcast %159 : f32 to vector<32x1xf32>
    %169 = arith.mulf %168, %167 : vector<32x1xf32>
    %170 = arith.subf %9, %169 : vector<32x1xf32>
    %c128_i32_43 = arith.constant 128 : i32
    %171 = vector.broadcast %c128_i32_43 : i32 to vector<32x256xi32>
    %172 = arith.cmpi sge, %17, %171 : vector<32x256xi32>
    %173 = vector.shape_cast %167 : vector<32x1xf32> to vector<32x1xf32>
    %174 = vector.broadcast %173 : vector<32x1xf32> to vector<32x256xf32>
    %175 = vector.shape_cast %145 : vector<32x1xf32> to vector<32x1xf32>
    %176 = vector.broadcast %175 : vector<32x1xf32> to vector<32x256xf32>
    %177 = arith.select %172, %174, %176 : vector<32x256xi1>, vector<32x256xf32>
    %178 = vector.shape_cast %170 : vector<32x1xf32> to vector<32x1xf32>
    %179 = vector.broadcast %178 : vector<32x1xf32> to vector<32x256xf32>
    %180 = vector.shape_cast %148 : vector<32x1xf32> to vector<32x1xf32>
    %181 = vector.broadcast %180 : vector<32x1xf32> to vector<32x256xf32>
    %182 = arith.select %172, %179, %181 : vector<32x256xi1>, vector<32x256xf32>
    %183 = arith.mulf %126, %177 : vector<32x256xf32>
    %184 = arith.addf %183, %182 : vector<32x256xf32>
    %185 = arith.truncf %184 : vector<32x256xf32> to vector<32x256xbf16>
    %cst_44 = arith.constant dense<0.000000e+00> : vector<16x256xf32>
    %186 = tpu.matmul %13, %185, %cst_44 {dimension_numbers = #tpu.dot_dimension_numbers<[1], [0], [0], [1], [0, 0, 1, 1], [], []>} : vector<16x32xbf16>, vector<32x256xbf16>, vector<16x256xf32> -> vector<16x256xf32>
    %187 = vector.broadcast %14 : vector<16x1xf32> to vector<16x256xf32>
    %188 = arith.addf %186, %187 : vector<16x256xf32>
    %189 = arith.addf %34, %188 : vector<16x256xf32>
    %c0_45 = arith.constant 0 : index
    %c0_46 = arith.constant 0 : index
    %190 = vector.load %arg5[%c0_45, %c0_46] : memref<16x256xf32, #tpu.memory_space<vmem>>, vector<16x256xf32>
    tpu.vector_store %arg5[%c0_45, %c0_46], %189 {strides = array<i32>} : memref<16x256xf32, #tpu.memory_space<vmem>>, vector<16x256xf32>,
    return
  }
}

</mosaic_0001>

<bundles_post_ra>
// kernel: conv1d_block.1
= control target key start
LH: loop header
LB: loop body
LE: loop exit
PB: predicated region body
PF: predicated region fallthrough
CT: control target
= control target key end

     0   :  { %10 = vsyncpa [#allocation3], 0  ;;  %s1544_s0 = inlined_call_operand.vmem [shape: f32[16,256], index: 0, kind: input, shape index: {}]   ;;  %s1545_s1 = inlined_call_operand.vmem [shape: f32[32,16], index: 1, kind: input, shape index: {}]   ;;  %s1546_s2 = inlined_call_operand.vmem [shape: f32[16,33], index: 2, kind: input, shape index: {}]   ;;  %s1547_s3 = inlined_call_operand.vmem [shape: f32[32,9], index: 3, kind: input, shape index: {}]   ;;  %s1548_s4 = inlined_call_operand.vmem [shape: f32[2], index: 4, kind: input, shape index: {}]   ;;  %s1549_s5 = inlined_call_operand.vmem [shape: f32[16,256], index: 5, kind: output, shape index: {}]  }
   0x1   :  { %s25_s20 = sshll.u32 %s1548_s4, 4  ;;  %s26_s20 = int_to_ptr.vmem [resolvable:$true] %s25_s20 }
   0x2   :  { %s1045_s21 = scalar_lea.vmem %s26_s20, 16  ;;  %p1050_p1 = scmp.lt.s32.totalorder %s26_s20, %s26_s20 }
   0x3   :  { %p1046_p0 = scmp.ne.s32.totalorder %s26_s20, %s1045_s21  ;;  %p1051_p2 = scmp.lt.s32.totalorder %s1045_s21, %s1045_s21 }
   0x5   :  { %p1052_p3 = por %p1051_p2, %p1050_p1 }
   0x7   :  { %p1053_p4 = pnand %p1052_p3, %p1046_p0 }
   0x9   :  { %1056 = shalt.err (!%p1053_p4)
}
   0xa   :  { %s1059_s22 = smov [#allocation2]  }
   0xb   :  { %28 = dma.vmem_to_smem %s26_s20, 16, %s1059_s22, [#allocation3]  }
   0xc   :  { %1057 = dma.done.wait [#allocation3], 16  }
   0xd   :  { %1058 = vsyncadd [#allocation3], 4294967280 }
   0xe   :  { %32 = sfence }
   0xf   :  { %v77_v0 = vld [vmem:[%s1544_s0 + $0x8] sm:$0xff]  ;;  %v79_v1 = vld [vmem:[%s1544_s0 + $0x18] sm:$0xff]  ;;  %v76_v2 = vld [vmem:[%s1544_s0] sm:$0xff]  ;;  %v1060_v5 = vmov 0   ;;  %vm102_vm0 = vcmask 130048   ;;  %s47_s21 = sld [smem:[#allocation2]] }
  0x10   :  { %v81_v3 = vpack.c.bf16 %v79_v1, %v77_v0  ;;  %v78_v4 = vld [vmem:[%s1544_s0 + $0x10] sm:$0xff]  ;;  %141 = vmatprep.mubr.bf16.mxu0 %v1060_v5  ;;  %v38_v6 = vld [vmem:[%s1545_s1] sm:$0xff]  ;;  %v39_v7 = vld [vmem:[%s1545_s1 + $0x8] sm:$0xff]  ;;  %1004 = vset.pattern.permute.xlu0 %v1060_v5  ;;  %s1061_s4 = smov 0.0   ;;  %s1063_s11 = smov 1  }
  0x11   :  { %v80_v8 = vpack.c.bf16 %v78_v4, %v76_v2  ;;  %v1127_v9 = vld [vmem:[%s1547_s3] sm:$0xff]  ;;  %1005 = vset.pattern.permute.xlu1 %v1060_v5  ;;  %938 = vmatprep.mubr.bf16.mxu1 %v1060_v5  ;;  %v42_v10 = vpack.c.bf16 %v39_v7, %v38_v6  ;;  %v1133_v11 = vld [vmem:[%s1547_s3 + $0x10] sm:$0xff]  ;;  %v1139_v12 = vld [vmem:[%s1547_s3 + $0x8] sm:$0xff]  ;;  %s1069_s15 = smov 127   ;;  %s962_s16 = sld [smem:[#allocation2 + $0x1]] }
  0x12   :  { %109 = vmatprep.subr.bf16.mxu0 %v81_v3  ;;  %84 = vperm.xlu0 %1004, %v1127_v9   ;;  %v1144_v13 = vld [vmem:[%s1547_s3 + $0x18] sm:$0xff]  ;;  %v40_v14 = vld [vmem:[%s1545_s1 + $0x10] sm:$0xff] }
  0x13   :  { %110 = vmatpush1.bf16.msra.mxu0 %v80_v8  ;;  %94 = vperm.xlu1 %1005, %v1133_v11   ;;  %v41_v15 = vld [vmem:[%s1545_s1 + $0x18] sm:$0xff] }
  0x14   :  { %v43_v16 = vpack.c.bf16 %v41_v15, %v40_v14 }
  0x15   :  { %v170_v19 = vstv %s47_s21 }
  0x16   :  { %963 = vmatmul.mubr.msk.bf16.vlgmr.msra.gmra.mrb[0].mxu0 %vm102_vm0, %v42_v10  ;;  %89 = vperm.xlu0 %1004, %v1139_v12  }
  0x17   :  { %151 = vmatprep.mubr.bf16.mxu0 %v1060_v5  ;;  %99 = vperm.xlu1 %1005, %v1144_v13  }
  0x1e   :  { %964 = vmatmul.mubr.msk.bf16.gmra.mrb[4].mxu0 %vm102_vm0, %v43_v16 }
  0x91   :  { %v85_v17 = vpop.permute.xlu0 %84 }
  0x92   :  { %v95_v28 = vpop.permute.xlu1 %94 }
  0x95   :  { %v90_v20 = vpop.permute.xlu0 %89 }
  0x96   :  { %v100_v41 = vpop.permute.xlu1 %99 }
  0xe9   :  { %v143_v18 = vpop.f32.mrb[0].mxu0 }
  0xea   :  { %v144_v21 = vadd.f32 %v143_v18, %v85_v17  ;;  %v145_v22 = vpop.f32.mrb[1].mxu0 }
  0xeb   :  { %v146_v23 = vadd.f32 %v145_v22, %v85_v17  ;;  %v147_v24 = vpop.f32.mrb[2].mxu0 }
  0xec   :  { %v171_v25 = vmul.f32 %v170_v19, %v144_v21  ;;  %v148_v26 = vadd.f32 %v147_v24, %v90_v20  ;;  %v149_v27 = vpop.f32.mrb[3].mxu0  ;;  %vm162_vm1 = vcmp.ge.f32.partialorder %v144_v21, 0.0 }
  0xed   :  { %v150_v29 = vadd.f32 %v149_v27, %v90_v20  ;;  %v172_v31 = vmul.f32 %v170_v19, %v146_v23  ;;  %vm163_vm4 = vcmp.ge.f32.partialorder %v146_v23, 0.0 }
  0xee   :  { %vm164_vm2 = vcmp.ge.f32.partialorder %v148_v26, 0.0  ;;  %v173_v30 = vmul.f32 %v170_v19, %v148_v26  ;;  %v1154_v33 = vsel %vm162_vm1, %v144_v21, %v171_v25 }
  0xef   :  { %vm165_vm3 = vcmp.ge.f32.partialorder %v150_v29, 0.0  ;;  %v174_v32 = vmul.f32 %v170_v19, %v150_v29  ;;  %v199_v39 = vmul.f32 %v1154_v33, %v1154_v33  ;;  %v1162_v40 = vsel %vm163_vm4, %v146_v23, %v172_v31 }
  0xf0   :  { %v1156_v34 = vsel %vm164_vm2, %v148_v26, %v173_v30  ;;  %v266_v58 = vmul.f32 %v1162_v40, %v1162_v40 }
  0xf1   :  { %v153_v35 = vpop.f32.mrb[4].mxu0  ;;  %v1158_v36 = vsel %vm165_vm3, %v150_v29, %v174_v32  ;;  %v187_v44 = vadd.f32 %v1156_v34, %v1154_v33  ;;  %v200_v48 = vmul.f32 %v1156_v34, %v1156_v34 }
  0xf2   :  { %v154_v37 = vadd.f32 %v153_v35, %v95_v28  ;;  %v155_v38 = vpop.f32.mrb[5].mxu0  ;;  %v267_v49 = vmul.f32 %v1158_v36, %v1158_v36  ;;  %v254_v54 = vadd.f32 %v1158_v36, %v1162_v40 }
  0xf3   :  { %v156_v42 = vadd.f32 %v155_v38, %v95_v28  ;;  %v157_v43 = vpop.f32.mrb[6].mxu0  ;;  %v203_v61 = vadd.f32 %v200_v48, %v199_v39 }
  0xf4   :  { %vm166_vm5 = vcmp.ge.f32.partialorder %v154_v37, 0.0  ;;  %v175_v45 = vmul.f32 %v170_v19, %v154_v37  ;;  %v158_v46 = vadd.f32 %v157_v43, %v100_v41  ;;  %v159_v47 = vpop.f32.mrb[7].mxu0  ;;  %v270_v4 = vadd.f32 %v267_v49, %v266_v58 }
  0xf5   :  { %vm167_vm6 = vcmp.ge.f32.partialorder %v156_v42, 0.0  ;;  %v176_v50 = vmul.f32 %v170_v19, %v156_v42  ;;  %v160_v51 = vadd.f32 %v159_v47, %v100_v41 }
  0xf6   :  { %v1170_v52 = vsel %vm166_vm5, %v154_v37, %v175_v45  ;;  %vm168_vm7 = vcmp.ge.f32.partialorder %v158_v46, 0.0  ;;  %v177_v53 = vmul.f32 %v170_v19, %v158_v46  ;;  %v1062_v45 = vmov 1  }
  0xf7   :  { %v1174_v55 = vsel %vm167_vm6, %v156_v42, %v176_v50  ;;  %vm169_vm8 = vcmp.ge.f32.partialorder %v160_v51, 0.0  ;;  %v178_v56 = vmul.f32 %v170_v19, %v160_v51  ;;  %v188_v57 = vadd.f32 %v187_v44, %v1170_v52  ;;  %1006 = vset.pattern.permute.xlu0 %v1062_v45  ;;  %1007 = vset.pattern.permute.xlu1 %v1062_v45 }
  0xf8   :  { %v1179_v59 = vsel %vm168_vm7, %v158_v46, %v177_v53  ;;  %v201_v60 = vmul.f32 %v1170_v52, %v1170_v52  ;;  %v255_v0 = vadd.f32 %v254_v54, %v1174_v55  ;;  %v268_v1 = vmul.f32 %v1174_v55, %v1174_v55 }
  0xf9   :  { %v189_v62 = vadd.f32 %v188_v57, %v1179_v59  ;;  %v202_v63 = vmul.f32 %v1179_v59, %v1179_v59  ;;  %v1189_v3 = vsel %vm169_vm8, %v160_v51, %v178_v56  ;;  %vm902_vm6 = vcmask 261120  }
  0xfa   :  { %v204_v2 = vadd.f32 %v203_v61, %v201_v60  ;;  %v256_v6 = vadd.f32 %v255_v0, %v1189_v3  ;;  %v269_v7 = vmul.f32 %v1189_v3, %v1189_v3  ;;  %v271_v8 = vadd.f32 %v270_v4, %v268_v1 }
  0xfb   :  { %190 = vadd.xlane.f32.xlu0 %v189_v62 }
  0xfc   :  { %v205_v5 = vadd.f32 %v204_v2, %v202_v63  ;;  %v272_v10 = vadd.f32 %v271_v8, %v269_v7 }
  0xfe   :  { %206 = vadd.xlane.f32.xlu1 %v205_v5 }
  0xff   :  { %257 = vadd.xlane.f32.xlu0 %v256_v6 }
 0x103   :  { %273 = vadd.xlane.f32.xlu0 %v272_v10 }
 0x188   :  { %v191_v14 = vpop.xlane.xlu0 %190 }
 0x189   :  { %v192_v15 = vrot.slane %v191_v14, 4 }
 0x18b   :  { %v193_v16 = vadd.f32 %v192_v15, %v191_v14  ;;  %v207_v17 = vpop.xlane.xlu1 %206  ;;  %v1064_v15 = vmov 2  }
 0x18c   :  { %v208_v18 = vrot.slane %v207_v17, 4  ;;  %v258_v28 = vpop.xlane.xlu0 %257 }
 0x18d   :  { %v194_v19 = vrot.slane %v193_v16, 2  ;;  %v259_v30 = vrot.slane %v258_v28, 4 }
 0x18e   :  { %v209_v20 = vadd.f32 %v208_v18, %v207_v17 }
 0x18f   :  { %v195_v21 = vadd.f32 %v194_v19, %v193_v16  ;;  %v260_v32 = vadd.f32 %v259_v30, %v258_v28  ;;  %v1065_v30 = vmov 4  }
 0x190   :  { %v210_v22 = vrot.slane %v209_v20, 2  ;;  %v274_v29 = vpop.xlane.xlu0 %273 }
 0x191   :  { %v196_v23 = vrot.slane %v195_v21, 1  ;;  %v275_v31 = vrot.slane %v274_v29, 4  ;;  %v261_v37 = vrot.slane %v260_v32, 2 }
 0x192   :  { %v211_v24 = vadd.f32 %v210_v22, %v209_v20 }
 0x193   :  { %v197_v25 = vadd.f32 %v196_v23, %v195_v21  ;;  %v276_v35 = vadd.f32 %v275_v31, %v274_v29  ;;  %v262_v41 = vadd.f32 %v261_v37, %v260_v32  ;;  %v1067_v37 = vmov 3  }
 0x194   :  { %v212_v26 = vrot.slane %v211_v24, 1 }
 0x195   :  { %966 = vpush %v197_v25  ;;  %v277_v38 = vrot.slane %v276_v35, 2  ;;  %v263_v43 = vrot.slane %v262_v41, 1 }
 0x196   :  { %v213_v27 = vadd.f32 %v212_v26, %v211_v24 }
 0x197   :  { %v278_v42 = vadd.f32 %v277_v38, %v276_v35  ;;  %v264_v47 = vadd.f32 %v263_v43, %v262_v41  ;;  %v1066_v35 = vmov 6   ;;  %v1068_v38 = vmov 5  }
 0x198   :  { %968 = vpush %v213_v27 }
 0x199   :  { %v279_v44 = vrot.slane %v278_v42, 1 }
 0x19b   :  { %v280_v48 = vadd.f32 %v279_v44, %v278_v42 }
 0x1c6   :  { %s967_s1 = spop %966 }
 0x1c7   :  { %s1194_s22 = smul.f32 0.00024414063, %s967_s1 }
 0x1c9   :  { %s217_s23 = smul.f32 %s1194_s22, %s1194_s22  ;;  %s969_s24 = spop %968  ;;  %v229_v53 = vstv %s1194_s22 }
 0x1ca   :  { %s216_s25 = smul.f32 0.00024414063, %s969_s24 }
 0x1cc   :  { %s218_s26 = ssub.f32 %s216_s25, %s217_s23 }
 0x1ce   :  { %s219_s27 = smax.f32 %s1061_s4, %s218_s26 }
 0x1cf   :  { %s220_s28 = sadd.f32 1e-05, %s219_s27 }
 0x1d1   :  { %v221_v39 = vstv %s220_s28 }
 0x1d2   :  { %1029 = vrsqrt.f32 %v221_v39 }
 0x1dc   :  { %v1030_v46 = vpop.eup %1029 }
 0x1dd   :  { %970 = vpush %v1030_v46 }
 0x1de   :  { %972 = vpush %v264_v47 }
 0x1df   :  { %974 = vpush %v280_v48 }
 0x20e   :  { %s971_s29 = spop %970 }
 0x20f   :  { %v224_v49 = vstv %s971_s29  ;;  %s973_s30 = spop %972 }
 0x210   :  { %v225_v50 = vmul.f32 %v224_v49, %v1127_v9  ;;  %v226_v51 = vmul.f32 %v224_v49, %v1139_v12  ;;  %s282_s6 = smul.f32 0.00024414063, %s973_s30  ;;  %s975_s7 = spop %974  ;;  %v227_v54 = vmul.f32 %v224_v49, %v1133_v11  ;;  %v228_v58 = vmul.f32 %v224_v49, %v1144_v13 }
 0x211   :  { %s283_s8 = smul.f32 0.00024414063, %s975_s7 }
 0x212   :  { %s284_s9 = smul.f32 %s282_s6, %s282_s6  ;;  %v231_v56 = vmul.f32 %v229_v53, %v226_v51  ;;  %v230_v57 = vmul.f32 %v229_v53, %v225_v50  ;;  %v232_v60 = vmul.f32 %v229_v53, %v227_v54  ;;  %v233_v62 = vmul.f32 %v229_v53, %v228_v58 }
 0x213   :  { %v296_v2 = vstv %s282_s6 }
 0x214   :  { %s285_s10 = ssub.f32 %s283_s8, %s284_s9  ;;  %240 = vrot.lane.b32.xlu0 %v231_v56, %s1063_s11  ;;  %238 = vrot.lane.b32.xlu1 %v230_v57, %s1063_s11 }
 0x216   :  { %s286_s12 = smax.f32 %s1061_s4, %s285_s10 }
 0x217   :  { %s287_s13 = sadd.f32 1e-05, %s286_s12 }
 0x218   :  { %242 = vrot.lane.b32.xlu0 %v232_v60, %s1063_s11 }
 0x219   :  { %v288_v61 = vstv %s287_s13 }
 0x21a   :  { %1031 = vrsqrt.f32 %v288_v61 }
 0x21c   :  { %244 = vrot.lane.b32.xlu0 %v233_v62, %s1063_s11 }
 0x224   :  { %v1032_v63 = vpop.eup %1031 }
 0x225   :  { %976 = vpush %v1032_v63 }
 0x256   :  { %s977_s14 = spop %976 }
 0x257   :  { %v291_v0 = vstv %s977_s14 }
 0x258   :  { %v292_v1 = vmul.f32 %v291_v0, %v1127_v9  ;;  %v293_v4 = vmul.f32 %v291_v0, %v1139_v12  ;;  %v294_v6 = vmul.f32 %v291_v0, %v1133_v11  ;;  %v295_v10 = vmul.f32 %v291_v0, %v1144_v13 }
 0x25a   :  { %325 = vperm.xlu0 %1006, %v292_v1   ;;  %v297_v5 = vmul.f32 %v296_v2, %v292_v1  ;;  %v298_v7 = vmul.f32 %v296_v2, %v293_v4  ;;  %v299_v8 = vmul.f32 %v296_v2, %v294_v6  ;;  %v300_v14 = vmul.f32 %v296_v2, %v295_v10 }
 0x25c   :  { %305 = vrot.lane.b32.xlu1 %v297_v5, %s1063_s11 }
 0x25e   :  { %350 = vperm.xlu0 %1006, %v226_v51  }
 0x260   :  { %307 = vrot.lane.b32.xlu1 %v298_v7, %s1063_s11 }
 0x262   :  { %355 = vperm.xlu0 %1006, %v227_v54  }
 0x264   :  { %309 = vrot.lane.b32.xlu1 %v299_v8, %s1063_s11 }
 0x266   :  { %340 = vperm.xlu0 %1006, %v295_v10  }
 0x268   :  { %311 = vrot.lane.b32.xlu1 %v300_v14, %s1063_s11 }
 0x26a   :  { %1009 = vset.pattern.permute.xlu0 %v1064_v15 }
 0x26c   :  { %330 = vperm.xlu1 %1007, %v293_v4  }
 0x270   :  { %345 = vperm.xlu1 %1007, %v225_v50  }
 0x274   :  { %335 = vperm.xlu1 %1007, %v294_v6  }
 0x278   :  { %360 = vperm.xlu1 %1007, %v228_v58  }
 0x27c   :  { %1008 = vset.pattern.permute.xlu1 %v1064_v15 }
 0x286   :  { %v239_v16 = vpop.permute.xlu1 %238  ;;  %v241_v17 = vpop.permute.xlu0 %240 }
 0x287   :  { %v250_v18 = vsub.f32 %v1127_v9, %v239_v16  ;;  %v251_v20 = vsub.f32 %v1139_v12, %v241_v17 }
 0x289   :  { %393 = vperm.xlu1 %1008, %v250_v18  }
 0x28a   :  { %v243_v19 = vpop.permute.xlu0 %242 }
 0x28b   :  { %v252_v21 = vsub.f32 %v1133_v11, %v243_v19 }
 0x28d   :  { %398 = vperm.xlu1 %1008, %v251_v20   ;;  %403 = vperm.xlu0 %1009, %v252_v21  }
 0x28e   :  { %v245_v22 = vpop.permute.xlu0 %244 }
 0x28f   :  { %v253_v23 = vsub.f32 %v1144_v13, %v245_v22 }
 0x291   :  { %408 = vperm.xlu1 %1008, %v253_v23  }
 0x2ce   :  { %v306_v24 = vpop.permute.xlu1 %305 }
 0x2cf   :  { %v317_v25 = vsub.f32 %v1127_v9, %v306_v24 }
 0x2d1   :  { %373 = vperm.xlu1 %1008, %v317_v25  }
 0x2d2   :  { %v308_v26 = vpop.permute.xlu1 %307 }
 0x2d3   :  { %v318_v27 = vsub.f32 %v1139_v12, %v308_v26  ;;  %v49_v26 = vlaneseq }
 0x2d5   :  { %378 = vperm.xlu0 %1009, %v318_v27  }
 0x2d6   :  { %v310_v28 = vpop.permute.xlu1 %309 }
 0x2d7   :  { %v319_v29 = vsub.f32 %v1133_v11, %v310_v28 }
 0x2d9   :  { %1010 = vset.pattern.permute.xlu0 %v1065_v30  ;;  %383 = vperm.xlu1 %1008, %v319_v29   ;;  %v326_v41 = vpop.permute.xlu0 %325  ;;  %v1307_v29 = vand.u32 127, %v49_v26 }
 0x2da   :  { %v312_v31 = vpop.permute.xlu1 %311  ;;  %436 = vperm.xlu0 %1010, %v1127_v9   ;;  %v420_v56 = vmul.f32 %v326_v41, %v1162_v40 }
 0x2db   :  { %v320_v32 = vsub.f32 %v1144_v13, %v312_v31  ;;  %v51_v31 = vadd.s32 128, %v1307_v29  ;;  %vm501_vm9 = vcmp.lt.s32.totalorder %v1307_v29, 1  ;;  %vm483_vm10 = vcmp.ge.s32.totalorder %v1307_v29, 1 }
 0x2dc   :  { %vm550_vm12 = vcmp.lt.s32.totalorder %v1307_v29, 127 }
 0x2dd   :  { %388 = vperm.xlu1 %1008, %v320_v32   ;;  %v351_v43 = vpop.permute.xlu0 %350 }
 0x2de   :  { %1012 = vset.pattern.permute.xlu0 %v1066_v35  ;;  %v421_v48 = vmul.f32 %v351_v43, %v1156_v34 }
 0x2df   :  { %460 = vperm.xlu0 %1012, %v1127_v9  }
 0x2e1   :  { %1011 = vset.pattern.permute.xlu1 %v1065_v30 }
 0x2e2   :  { %440 = vperm.xlu1 %1011, %v1139_v12  }
 0x2e3   :  { %1015 = vset.pattern.permute.xlu0 %v1067_v37 }
 0x2e4   :  { %523 = vperm.xlu0 %1015, %v1139_v12  }
 0x2e6   :  { %444 = vperm.xlu1 %1011, %v1133_v11  }
 0x2e8   :  { %527 = vperm.xlu0 %1015, %v1133_v11  }
 0x2ea   :  { %1013 = vset.pattern.permute.xlu1 %v1066_v35 }
 0x2eb   :  { %464 = vperm.xlu1 %1013, %v1139_v12   ;;  %v331_v39 = vpop.permute.xlu1 %330 }
 0x2ec   :  { %1019 = vset.pattern.permute.xlu0 %v1068_v38  ;;  %v422_v60 = vmul.f32 %v331_v39, %v1158_v36 }
 0x2ed   :  { %590 = vperm.xlu0 %1019, %v1139_v12   ;;  %v356_v12 = vpop.permute.xlu0 %355 }
 0x2ef   :  { %1014 = vset.pattern.permute.xlu1 %v1067_v37  ;;  %v346_v42 = vpop.permute.xlu1 %345 }
 0x2f0   :  { %519 = vperm.xlu1 %1014, %v1127_v9  }
 0x2f1   :  { %594 = vperm.xlu0 %1019, %v1133_v11   ;;  %v341_v47 = vpop.permute.xlu0 %340 }
 0x2f2   :  { %v426_v40 = vmul.f32 %v341_v47, %v1189_v3 }
 0x2f3   :  { %v336_v44 = vpop.permute.xlu1 %335 }
 0x2f4   :  { %1016 = vset.pattern.permute.xlu1 %v1065_v30  ;;  %v424_v62 = vmul.f32 %v336_v44, %v1174_v55 }
 0x2f5   :  { %448 = vperm.xlu1 %1016, %v1144_v13  }
 0x2f7   :  { %v361_v45 = vpop.permute.xlu1 %360 }
 0x2f9   :  { %1017 = vset.pattern.permute.xlu1 %v1066_v35 }
 0x2fa   :  { %468 = vperm.xlu1 %1017, %v1133_v11   ;;  %v419_v11 = vmul.f32 %v346_v42, %v1154_v33  ;;  %v425_v33 = vmul.f32 %v361_v45, %v1179_v59 }
 0x2fe   :  { %1018 = vset.pattern.permute.xlu1 %v1068_v38 }
 0x2ff   :  { %586 = vperm.xlu1 %1018, %v1127_v9   ;;  %v423_v9 = vmul.f32 %v356_v12, %v1170_v52 }
 0x303   :  { %1020 = vset.pattern.permute.xlu1 %v1066_v35 }
 0x304   :  { %472 = vperm.xlu1 %1020, %v1144_v13  }
 0x308   :  { %1021 = vset.pattern.permute.xlu1 %v1067_v37  ;;  %v394_v46 = vpop.permute.xlu1 %393  ;;  %v63_v37 = vand.u32 127, %v51_v31 }
 0x309   :  { %531 = vperm.xlu1 %1021, %v1144_v13   ;;  %v1248_v53 = vadd.f32 %v419_v11, %v394_v46 }
 0x30a   :  { %vm1319_vm11 = vcmp.ge.s32.totalorder %v63_v37, 1  ;;  %vm1329_vm13 = vcmp.lt.s32.totalorder %v63_v37, 127 }
 0x30c   :  { %v399_v49 = vpop.permute.xlu1 %398  ;;  %v404_v51 = vpop.permute.xlu0 %403 }
 0x30d   :  { %v1241_v50 = vadd.f32 %v421_v48, %v399_v49  ;;  %1022 = vset.pattern.permute.xlu1 %v1068_v38  ;;  %v1250_v54 = vadd.f32 %v423_v9, %v404_v51  ;;  %v1337_v9 = vstv %s962_s16 }
 0x30e   :  { %598 = vperm.xlu1 %1022, %v1144_v13  }
 0x30f   :  { %487 = vrot.lane.b32.xlu0 %v1241_v50, %s1063_s11 }
 0x310   :  { %v409_v34 = vpop.permute.xlu1 %408 }
 0x311   :  { %v1261_v52 = vadd.f32 %v425_v33, %v409_v34 }
 0x312   :  { %485 = vrot.lane.b32.xlu1 %v1248_v53, %s1063_s11 }
 0x313   :  { %489 = vrot.lane.b32.xlu0 %v1250_v54, %s1063_s11 }
 0x316   :  { %554 = vrot.lane.b32.xlu1 %v1241_v50, %s1069_s15 }
 0x317   :  { %552 = vrot.lane.b32.xlu0 %v1248_v53, %s1069_s15 }
 0x31b   :  { %491 = vrot.lane.b32.xlu0 %v1261_v52, %s1063_s11 }
 0x31f   :  { %556 = vrot.lane.b32.xlu0 %v1250_v54, %s1069_s15 }
 0x350   :  { %v374_v57 = vpop.permute.xlu1 %373 }
 0x351   :  { %v428_v58 = vadd.f32 %v420_v56, %v374_v57 }
 0x353   :  { %493 = vrot.lane.b32.xlu1 %v428_v58, %s1063_s11 }
 0x354   :  { %v379_v59 = vpop.permute.xlu0 %378 }
 0x355   :  { %v430_v61 = vadd.f32 %v422_v60, %v379_v59 }
 0x357   :  { %495 = vrot.lane.b32.xlu0 %v430_v61, %s1063_s11 }
 0x358   :  { %v384_v63 = vpop.permute.xlu1 %383 }
 0x359   :  { %v432_v0 = vadd.f32 %v424_v62, %v384_v63  ;;  %v437_v3 = vpop.permute.xlu0 %436 }
 0x35a   :  { %v451_v42 = vmul.f32 %v437_v3, %v1248_v53  ;;  %v452_v12 = vmul.f32 %v437_v3, %v428_v58 }
 0x35b   :  { %497 = vrot.lane.b32.xlu1 %v432_v0, %s1063_s11  ;;  %560 = vrot.lane.b32.xlu0 %v428_v58, %s1069_s15 }
 0x35c   :  { %v389_v1 = vpop.permute.xlu1 %388 }
 0x35d   :  { %v1278_v36 = vadd.f32 %v426_v40, %v389_v1 }
 0x35e   :  { %v461_v6 = vpop.permute.xlu0 %460 }
 0x35f   :  { %562 = vrot.lane.b32.xlu1 %v430_v61, %s1069_s15  ;;  %558 = vrot.lane.b32.xlu0 %v1261_v52, %s1069_s15  ;;  %v475_v48 = vadd.f32 %v461_v6, %v451_v42  ;;  %v476_v34 = vadd.f32 %v461_v6, %v452_v12 }
 0x361   :  { %v441_v2 = vpop.permute.xlu1 %440 }
 0x362   :  { %v454_v55 = vmul.f32 %v441_v2, %v430_v61  ;;  %v453_v45 = vmul.f32 %v441_v2, %v1241_v50 }
 0x363   :  { %499 = vrot.lane.b32.xlu1 %v1278_v36, %s1063_s11  ;;  %v1287_v8 = vpop.permute.xlu0 %523 }
 0x365   :  { %v445_v4 = vpop.permute.xlu1 %444 }
 0x366   :  { %v1282_v5 = vmul.f32 %v445_v4, %v432_v0  ;;  %v455_v50 = vmul.f32 %v445_v4, %v1250_v54 }
 0x367   :  { %564 = vrot.lane.b32.xlu1 %v432_v0, %s1069_s15  ;;  %v1289_v14 = vpop.permute.xlu0 %527 }
 0x36a   :  { %v465_v7 = vpop.permute.xlu1 %464 }
 0x36b   :  { %566 = vrot.lane.b32.xlu1 %v1278_v36, %s1069_s15  ;;  %v477_v33 = vadd.f32 %v465_v7, %v453_v45  ;;  %v478_v57 = vadd.f32 %v465_v7, %v454_v55 }
 0x36c   :  { %v1291_v16 = vpop.permute.xlu0 %590 }
 0x36f   :  { %v520_v10 = vpop.permute.xlu1 %519 }
 0x370   :  { %v1297_v19 = vpop.permute.xlu0 %594 }
 0x374   :  { %v449_v15 = vpop.permute.xlu1 %448 }
 0x375   :  { %v457_v61 = vmul.f32 %v449_v15, %v1261_v52  ;;  %v458_v0 = vmul.f32 %v449_v15, %v1278_v36 }
 0x379   :  { %v1293_v17 = vpop.permute.xlu1 %468 }
 0x37a   :  { %v480_v37 = vadd.f32 %v1293_v17, %v1282_v5 }
 0x37e   :  { %v1295_v18 = vpop.permute.xlu1 %586 }
 0x381   :  { %v488_v21 = vpop.permute.xlu0 %487 }
 0x383   :  { %v1299_v20 = vpop.permute.xlu1 %472 }
 0x384   :  { %v481_v42 = vadd.f32 %v1299_v20, %v457_v61 }
 0x385   :  { %v490_v23 = vpop.permute.xlu0 %489 }
 0x388   :  { %v1301_v22 = vpop.permute.xlu1 %531 }
 0x389   :  { %v553_v25 = vpop.permute.xlu0 %552 }
 0x38d   :  { %v1303_v24 = vpop.permute.xlu1 %598  ;;  %v1305_v28 = vpop.permute.xlu0 %491 }
 0x391   :  { %v486_v27 = vpop.permute.xlu1 %485  ;;  %v1310_v32 = vpop.permute.xlu0 %556 }
 0x395   :  { %v555_v30 = vpop.permute.xlu1 %554 }
 0x3c5   :  { %v494_v35 = vpop.permute.xlu1 %493 }
 0x3c6   :  { %v506_v38 = vsel %vm501_vm9, %v494_v35, %v486_v27  ;;  %v502_v44 = vsel %vm501_vm9, %v486_v27, %v494_v35 }
 0x3c7   :  { %v510_v46 = vsel %vm483_vm10, %v506_v38, 0.0  ;;  %v511_v56 = vsel %vm1319_vm11, %v502_v44, 0.0  ;;  %v482_v44 = vadd.f32 %v1299_v20, %v458_v0 }
 0x3c8   :  { %v534_v58 = vmul.f32 %v520_v10, %v510_v46  ;;  %v535_v1 = vmul.f32 %v520_v10, %v511_v56 }
 0x3c9   :  { %v496_v39 = vpop.permute.xlu0 %495 }
 0x3ca   :  { %v507_v41 = vsel %vm501_vm9, %v496_v39, %v488_v21  ;;  %v503_v49 = vsel %vm501_vm9, %v488_v21, %v496_v39  ;;  %v542_v36 = vadd.f32 %v534_v58, %v475_v48  ;;  %v479_v21 = vadd.f32 %v1293_v17, %v455_v50 }
 0x3cb   :  { %v512_v11 = vsel %vm483_vm10, %v507_v41, 0.0  ;;  %v513_v62 = vsel %vm1319_vm11, %v503_v49, 0.0  ;;  %v543_v12 = vadd.f32 %v535_v1, %v476_v34 }
 0x3cc   :  { %v536_v63 = vmul.f32 %v1287_v8, %v512_v11  ;;  %v537_v7 = vmul.f32 %v1287_v8, %v513_v62 }
 0x3cd   :  { %v498_v51 = vpop.permute.xlu1 %497  ;;  %v561_v53 = vpop.permute.xlu0 %560 }
 0x3ce   :  { %v508_v60 = vsel %vm501_vm9, %v498_v51, %v490_v23  ;;  %v569_v59 = vsel %vm550_vm12, %v553_v25, %v561_v53  ;;  %v504_v40 = vsel %vm501_vm9, %v490_v23, %v498_v51  ;;  %v573_v4 = vsel %vm550_vm12, %v561_v53, %v553_v25 }
 0x3cf   :  { %v577_v54 = vsel %vm550_vm12, %v569_v59, 0.0  ;;  %v514_v52 = vsel %vm483_vm10, %v508_v60, 0.0  ;;  %v544_v23 = vadd.f32 %v536_v63, %v477_v33  ;;  %v515_v25 = vsel %vm1319_vm11, %v504_v40, 0.0 }
 0x3d0   :  { %v601_v2 = vmul.f32 %v1295_v18, %v577_v54  ;;  %v538_v27 = vmul.f32 %v1289_v14, %v514_v52  ;;  %v545_v45 = vadd.f32 %v537_v7, %v478_v57 }
 0x3d1   :  { %v563_v55 = vpop.permute.xlu1 %562  ;;  %v559_v58 = vpop.permute.xlu0 %558 }
 0x3d2   :  { %v570_v3 = vsel %vm550_vm12, %v555_v30, %v563_v55  ;;  %v574_v6 = vsel %vm550_vm12, %v563_v55, %v555_v30  ;;  %v578_v30 = vsel %vm1329_vm13, %v573_v4, 0.0  ;;  %v609_v8 = vadd.f32 %v601_v2, %v542_v36 }
 0x3d3   :  { %v579_v10 = vsel %vm550_vm12, %v570_v3, 0.0  ;;  %v580_v15 = vsel %vm1329_vm13, %v574_v6, 0.0  ;;  %v602_v46 = vmul.f32 %v1295_v18, %v578_v30  ;;  %v546_v48 = vadd.f32 %v538_v27, %v479_v21 }
 0x3d4   :  { %v603_v26 = vmul.f32 %v1291_v16, %v579_v10  ;;  %v604_v31 = vmul.f32 %v1291_v16, %v580_v15  ;;  %v539_v16 = vmul.f32 %v1289_v14, %v515_v25  ;;  %v626_v49 = vmul.f32 %v1337_v9, %v609_v8 }
 0x3d5   :  { %v500_v35 = vpop.permute.xlu1 %499  ;;  %vm617_vm14 = vcmp.ge.f32.partialorder %v609_v8, 0.0  ;;  %v610_v33 = vadd.f32 %v602_v46, %v543_v12 }
 0x3d6   :  { %v611_v38 = vadd.f32 %v603_v26, %v544_v23  ;;  %v505_v39 = vsel %vm501_vm9, %v1305_v28, %v500_v35  ;;  %v509_v41 = vsel %vm501_vm9, %v500_v35, %v1305_v28  ;;  %v612_v28 = vadd.f32 %v604_v31, %v545_v45 }
 0x3d7   :  { %v516_v5 = vsel %vm483_vm10, %v509_v41, 0.0  ;;  %v517_v17 = vsel %vm1319_vm11, %v505_v39, 0.0  ;;  %v547_v50 = vadd.f32 %v539_v16, %v480_v37  ;;  %v1410_v59 = vsel %vm617_vm14, %v609_v8, %v626_v49 }
 0x3d8   :  { %v628_v11 = vmul.f32 %v1337_v9, %v611_v38  ;;  %vm619_vm15 = vcmp.ge.f32.partialorder %v611_v38, 0.0  ;;  %v540_v18 = vmul.f32 %v1301_v22, %v516_v5  ;;  %v541_v43 = vmul.f32 %v1301_v22, %v517_v17 }
 0x3d9   :  { %v565_v51 = vpop.permute.xlu1 %564  ;;  %vm620_vm0 = vcmp.ge.f32.partialorder %v612_v28, 0.0  ;;  %v627_v4 = vmul.f32 %v1337_v9, %v610_v33  ;;  %v654_v3 = vmul.f32 %v1410_v59, %v1410_v59  ;;  %vm618_vm2 = vcmp.ge.f32.partialorder %v610_v33, 0.0 }
 0x3da   :  { %v571_v20 = vsel %vm550_vm12, %v1310_v32, %v565_v51  ;;  %v575_v14 = vsel %vm550_vm12, %v565_v51, %v1310_v32  ;;  %v629_v32 = vmul.f32 %v1337_v9, %v612_v28  ;;  %v1412_v61 = vsel %vm619_vm15, %v611_v38, %v628_v11 }
 0x3db   :  { %v581_v53 = vsel %vm550_vm12, %v571_v20, 0.0  ;;  %v582_v34 = vsel %vm1329_vm13, %v575_v14, 0.0  ;;  %v548_v0 = vadd.f32 %v540_v18, %v481_v42  ;;  %v549_v1 = vadd.f32 %v541_v43, %v482_v44 }
 0x3dc   :  { %v605_v56 = vmul.f32 %v1297_v19, %v581_v53  ;;  %v606_v57 = vmul.f32 %v1297_v19, %v582_v34  ;;  %v655_v6 = vmul.f32 %v1412_v61, %v1412_v61  ;;  %v1438_v15 = vsel %vm620_vm0, %v612_v28, %v629_v32 }
 0x3dd   :  { %v567_v60 = vpop.permute.xlu1 %566  ;;  %v1443_v27 = vsel %vm618_vm2, %v610_v33, %v627_v4 }
 0x3de   :  { %v613_v22 = vadd.f32 %v605_v56, %v546_v48  ;;  %v614_v62 = vadd.f32 %v606_v57, %v547_v50  ;;  %v572_v63 = vsel %vm550_vm12, %v559_v58, %v567_v60  ;;  %v576_v54 = vsel %vm550_vm12, %v567_v60, %v559_v58 }
 0x3df   :  { %v583_v19 = vsel %vm550_vm12, %v572_v63, 0.0  ;;  %v584_v40 = vsel %vm1329_vm13, %v576_v54, 0.0  ;;  %v658_v26 = vadd.f32 %v655_v6, %v654_v3  ;;  %v709_v31 = vadd.f32 %v1438_v15, %v1443_v27 }
 0x3e0   :  { %v607_v2 = vmul.f32 %v1303_v24, %v583_v19  ;;  %v608_v55 = vmul.f32 %v1303_v24, %v584_v40  ;;  %vm621_vm1 = vcmp.ge.f32.partialorder %v613_v22, 0.0  ;;  %v630_v52 = vmul.f32 %v1337_v9, %v613_v22 }
 0x3e1   :  { %v631_v7 = vmul.f32 %v1337_v9, %v614_v62  ;;  %v642_v24 = vadd.f32 %v1412_v61, %v1410_v59  ;;  %vm622_vm3 = vcmp.ge.f32.partialorder %v614_v62, 0.0  ;;  %v721_v44 = vmul.f32 %v1443_v27, %v1443_v27 }
 0x3e2   :  { %v615_v29 = vadd.f32 %v607_v2, %v548_v0  ;;  %v616_v36 = vadd.f32 %v608_v55, %v549_v1  ;;  %v1430_v47 = vsel %vm621_vm1, %v613_v22, %v630_v52  ;;  %v1070_v3 = vmov 7  }
 0x3e3   :  { %v656_v10 = vmul.f32 %v1430_v47, %v1430_v47  ;;  %v643_v25 = vadd.f32 %v642_v24, %v1430_v47  ;;  %v1447_v8 = vsel %vm622_vm3, %v614_v62, %v631_v7  ;;  %1023 = vset.pattern.permute.xlu0 %v1070_v3  ;;  %1024 = vset.pattern.permute.xlu1 %v1070_v3  ;;  %v1480_v7 = vld [vmem:[%s1547_s3 + $0x10] sm:$0xff] }
 0x3e4   :  { %vm623_vm4 = vcmp.ge.f32.partialorder %v615_v29, 0.0  ;;  %v632_v21 = vmul.f32 %v1337_v9, %v615_v29  ;;  %v633_v23 = vmul.f32 %v1337_v9, %v616_v36  ;;  %vm624_vm5 = vcmp.ge.f32.partialorder %v616_v36, 0.0 }
 0x3e5   :  { %v659_v38 = vadd.f32 %v658_v26, %v656_v10  ;;  %v722_v9 = vmul.f32 %v1438_v15, %v1438_v15  ;;  %v710_v42 = vadd.f32 %v709_v31, %v1447_v8  ;;  %v723_v12 = vmul.f32 %v1447_v8, %v1447_v8 }
 0x3e6   :  { %v1445_v30 = vsel %vm623_vm4, %v615_v29, %v632_v21  ;;  %v1456_v39 = vsel %vm624_vm5, %v616_v36, %v633_v23  ;;  %v1474_v29 = vld [vmem:[%s1547_s3] sm:$0xff]  ;;  %v1039_v23 = vld [vmem:[%s1547_s3 + $0x8] sm:$0xff] }
 0x3e7   :  { %v644_v35 = vadd.f32 %v643_v25, %v1445_v30  ;;  %v657_v37 = vmul.f32 %v1445_v30, %v1445_v30  ;;  %v711_v45 = vadd.f32 %v710_v42, %v1456_v39  ;;  %v724_v16 = vmul.f32 %v1456_v39, %v1456_v39 }
 0x3e8   :  { %v725_v46 = vadd.f32 %v722_v9, %v721_v44 }
 0x3e9   :  { %645 = vadd.xlane.f32.xlu0 %v644_v35  ;;  %v660_v41 = vadd.f32 %v659_v38, %v657_v37 }
 0x3ea   :  { %v726_v5 = vadd.f32 %v725_v46, %v723_v12 }
 0x3eb   :  { %661 = vadd.xlane.f32.xlu1 %v660_v41 }
 0x3ec   :  { %v727_v17 = vadd.f32 %v726_v5, %v724_v16 }
 0x3ed   :  { %712 = vadd.xlane.f32.xlu0 %v711_v45  ;;  %v1040_v45 = vld [vmem:[%s1547_s3 + $0x18] sm:$0xff] }
 0x3f1   :  { %728 = vadd.xlane.f32.xlu0 %v727_v17 }
 0x476   :  { %v646_v48 = vpop.xlane.xlu0 %645 }
 0x477   :  { %v647_v49 = vrot.slane %v646_v48, 4 }
 0x478   :  { %v662_v28 = vpop.xlane.xlu1 %661 }
 0x479   :  { %v648_v11 = vadd.f32 %v647_v49, %v646_v48  ;;  %v663_v51 = vrot.slane %v662_v28, 4  ;;  %v1071_v49 = vmov 8  }
 0x47a   :  { %v713_v57 = vpop.xlane.xlu0 %712 }
 0x47b   :  { %v649_v20 = vrot.slane %v648_v11, 2  ;;  %v664_v14 = vadd.f32 %v663_v51, %v662_v28  ;;  %v714_v58 = vrot.slane %v713_v57, 4 }
 0x47d   :  { %v665_v18 = vrot.slane %v664_v14, 2  ;;  %v650_v43 = vadd.f32 %v649_v20, %v648_v11  ;;  %v715_v22 = vadd.f32 %v714_v58, %v713_v57 }
 0x47e   :  { %v729_v32 = vpop.xlane.xlu0 %728 }
 0x47f   :  { %v651_v53 = vrot.slane %v650_v43, 1  ;;  %v666_v34 = vadd.f32 %v665_v18, %v664_v14  ;;  %v730_v60 = vrot.slane %v729_v32, 4  ;;  %v716_v63 = vrot.slane %v715_v22, 2 }
 0x481   :  { %v652_v50 = vadd.f32 %v651_v53, %v650_v43  ;;  %v667_v33 = vrot.slane %v666_v34, 1  ;;  %v731_v62 = vadd.f32 %v730_v60, %v729_v32  ;;  %v717_v1 = vadd.f32 %v716_v63, %v715_v22  ;;  %v44_v22 = vld [vmem:[%s1546_s2] sm:$0xff] }
 0x483   :  { %978 = vpush %v652_v50  ;;  %v668_v56 = vadd.f32 %v667_v33, %v666_v34  ;;  %v732_v54 = vrot.slane %v731_v62, 2  ;;  %v718_v40 = vrot.slane %v717_v1, 1 }
 0x485   :  { %980 = vpush %v668_v56  ;;  %v733_v19 = vadd.f32 %v732_v54, %v731_v62  ;;  %v719_v52 = vadd.f32 %v718_v40, %v717_v1  ;;  %v45_v62 = vld [vmem:[%s1546_s2 + $0x8] sm:$0xff]  ;;  %v1072_v54 = vmov 32  }
 0x486   :  { %v46_v63 = vpack.c.bf16 %v45_v62, %v44_v22 }
 0x487   :  { %v734_v2 = vrot.slane %v733_v19, 1 }
 0x489   :  { %v735_v4 = vadd.f32 %v734_v2, %v733_v19 }
 0x4b4   :  { %s979_s17 = spop %978 }
 0x4b5   :  { %s1466_s18 = smul.f32 0.00024414063, %s979_s17 }
 0x4b6   :  { %s981_s19 = spop %980 }
 0x4b7   :  { %s672_s20 = smul.f32 %s1466_s18, %s1466_s18  ;;  %v684_v21 = vstv %s1466_s18 }
 0x4b8   :  { %s671_s21 = smul.f32 0.00024414063, %s981_s19 }
 0x4ba   :  { %s673_s1 = ssub.f32 %s671_s21, %s672_s20 }
 0x4bc   :  { %s674_s22 = smax.f32 %s1061_s4, %s673_s1 }
 0x4bd   :  { %s675_s23 = sadd.f32 1e-05, %s674_s22 }
 0x4bf   :  { %v676_v0 = vstv %s675_s23 }
 0x4c0   :  { %1033 = vrsqrt.f32 %v676_v0 }
 0x4ca   :  { %v1034_v55 = vpop.eup %1033 }
 0x4cb   :  { %982 = vpush %v1034_v55 }
 0x4cc   :  { %984 = vpush %v719_v52 }
 0x4cd   :  { %986 = vpush %v735_v4 }
 0x4fc   :  { %s983_s24 = spop %982 }
 0x4fd   :  { %v679_v6 = vstv %s983_s24  ;;  %s985_s25 = spop %984 }
 0x4fe   :  { %v680_v36 = vmul.f32 %v1474_v29, %v679_v6  ;;  %v682_v24 = vmul.f32 %v1480_v7, %v679_v6  ;;  %v683_v10 = vmul.f32 %v679_v6, %v1144_v13  ;;  %s737_s30 = smul.f32 0.00024414063, %s985_s25  ;;  %s987_s6 = spop %986  ;;  %v681_v25 = vmul.f32 %v1039_v23, %v679_v6 }
 0x4ff   :  { %s738_s7 = smul.f32 0.00024414063, %s987_s6 }
 0x500   :  { %s739_s10 = smul.f32 %s737_s30, %s737_s30  ;;  %v685_v26 = vmul.f32 %v684_v21, %v680_v36  ;;  %v687_v31 = vmul.f32 %v684_v21, %v682_v24  ;;  %v688_v35 = vmul.f32 %v684_v21, %v683_v10  ;;  %v686_v37 = vmul.f32 %v684_v21, %v681_v25 }
 0x501   :  { %v751_v44 = vstv %s737_s30 }
 0x502   :  { %s740_s12 = ssub.f32 %s738_s7, %s739_s10  ;;  %693 = vrot.lane.b32.xlu1 %v685_v26, %s1063_s11 }
 0x504   :  { %s741_s13 = smax.f32 %s1061_s4, %s740_s12 }
 0x505   :  { %s742_s14 = sadd.f32 1e-05, %s741_s13 }
 0x506   :  { %695 = vrot.lane.b32.xlu1 %v686_v37, %s1063_s11 }
 0x507   :  { %v743_v13 = vstv %s742_s14 }
 0x508   :  { %1035 = vrsqrt.f32 %v743_v13 }
 0x512   :  { %v1036_v38 = vpop.eup %1035 }
 0x513   :  { %988 = vpush %v1036_v38 }
 0x544   :  { %s989_s15 = spop %988 }
 0x545   :  { %v746_v9 = vstv %s989_s15 }
 0x546   :  { %v747_v41 = vmul.f32 %v1474_v29, %v746_v9  ;;  %v748_v42 = vmul.f32 %v1039_v23, %v746_v9  ;;  %v749_v12 = vmul.f32 %v1480_v7, %v746_v9  ;;  %v750_v16 = vmul.f32 %v1040_v45, %v746_v9 }
 0x548   :  { %v753_v46 = vmul.f32 %v751_v44, %v748_v42  ;;  %v752_v5 = vmul.f32 %v751_v44, %v747_v41  ;;  %v754_v17 = vmul.f32 %v751_v44, %v749_v12  ;;  %v755_v48 = vmul.f32 %v751_v44, %v750_v16 }
 0x54a   :  { %762 = vrot.lane.b32.xlu0 %v753_v46, %s1063_s11  ;;  %760 = vrot.lane.b32.xlu1 %v752_v5, %s1063_s11 }
 0x54e   :  { %764 = vrot.lane.b32.xlu0 %v754_v17, %s1063_s11  ;;  %766 = vrot.lane.b32.xlu1 %v755_v48, %s1063_s11 }
 0x552   :  { %697 = vrot.lane.b32.xlu0 %v687_v31, %s1063_s11  ;;  %699 = vrot.lane.b32.xlu1 %v688_v35, %s1063_s11 }
 0x556   :  { %778 = vperm.xlu0 %1023, %v747_v41   ;;  %783 = vperm.xlu1 %1024, %v748_v42  }
 0x55a   :  { %803 = vperm.xlu0 %1023, %v681_v25   ;;  %798 = vperm.xlu1 %1024, %v680_v36  }
 0x55e   :  { %788 = vperm.xlu0 %1023, %v749_v12   ;;  %793 = vperm.xlu1 %1024, %v750_v16  }
 0x562   :  { %813 = vperm.xlu0 %1023, %v683_v10   ;;  %808 = vperm.xlu1 %1024, %v682_v24  }
 0x566   :  { %1025 = vset.pattern.permute.xlu1 %v1071_v49  ;;  %1026 = vset.pattern.permute.xlu0 %v1071_v49 }
 0x574   :  { %v694_v28 = vpop.permute.xlu1 %693 }
 0x575   :  { %v705_v11 = vsub.f32 %v1474_v29, %v694_v28 }
 0x577   :  { %846 = vperm.xlu1 %1025, %v705_v11  }
 0x578   :  { %v696_v51 = vpop.permute.xlu1 %695 }
 0x579   :  { %v706_v20 = vsub.f32 %v1039_v23, %v696_v51 }
 0x57b   :  { %851 = vperm.xlu1 %1025, %v706_v20   ;;  %v1042_v20 = vld [vmem:[%s1544_s0 + $0x8] sm:$0xff] }
 0x5bc   :  { %v763_v14 = vpop.permute.xlu0 %762  ;;  %v761_v18 = vpop.permute.xlu1 %760 }
 0x5bd   :  { %v773_v43 = vsub.f32 %v1039_v23, %v763_v14  ;;  %v772_v53 = vsub.f32 %v1474_v29, %v761_v18 }
 0x5bf   :  { %831 = vperm.xlu0 %1026, %v773_v43   ;;  %826 = vperm.xlu1 %1025, %v772_v53   ;;  %v1043_v43 = vld [vmem:[%s1544_s0 + $0x10] sm:$0xff] }
 0x5c0   :  { %v765_v34 = vpop.permute.xlu0 %764  ;;  %v767_v50 = vpop.permute.xlu1 %766 }
 0x5c1   :  { %v774_v33 = vsub.f32 %v1480_v7, %v765_v34  ;;  %v775_v56 = vsub.f32 %v1040_v45, %v767_v50  ;;  %v1044_v34 = vld [vmem:[%s1544_s0 + $0x18] sm:$0xff] }
 0x5c3   :  { %836 = vperm.xlu1 %1025, %v774_v33   ;;  %841 = vperm.xlu0 %1026, %v775_v56  }
 0x5c4   :  { %v698_v57 = vpop.permute.xlu0 %697  ;;  %v700_v58 = vpop.permute.xlu1 %699 }
 0x5c5   :  { %v707_v32 = vsub.f32 %v1480_v7, %v698_v57  ;;  %v708_v60 = vsub.f32 %v1040_v45, %v700_v58 }
 0x5c7   :  { %856 = vperm.xlu1 %1025, %v707_v32   ;;  %1027 = vset.pattern.permute.xlu0 %v1072_v54 }
 0x5c8   :  { %894 = vperm.xlu0 %1027, %v44_v22  }
 0x5cb   :  { %861 = vperm.xlu1 %1025, %v708_v60  }
 0x5cf   :  { %1028 = vset.pattern.permute.xlu1 %v1072_v54 }
 0x5d0   :  { %899 = vperm.xlu1 %1028, %v45_v62  }
 0x5d5   :  { %v784_v0 = vpop.permute.xlu1 %783  ;;  %v779_v19 = vpop.permute.xlu0 %778 }
 0x5d6   :  { %v873_v36 = vmul.f32 %v779_v19, %v1443_v27  ;;  %v875_v7 = vmul.f32 %v784_v0, %v1438_v15 }
 0x5d9   :  { %v799_v1 = vpop.permute.xlu1 %798  ;;  %v804_v2 = vpop.permute.xlu0 %803 }
 0x5da   :  { %v874_v29 = vmul.f32 %v804_v2, %v1412_v61  ;;  %v872_v24 = vmul.f32 %v799_v1, %v1410_v59 }
 0x5dd   :  { %v794_v40 = vpop.permute.xlu1 %793  ;;  %v789_v52 = vpop.permute.xlu0 %788 }
 0x5de   :  { %v877_v35 = vmul.f32 %v789_v52, %v1447_v8  ;;  %v879_v37 = vmul.f32 %v794_v40, %v1456_v39 }
 0x5e1   :  { %v809_v55 = vpop.permute.xlu1 %808  ;;  %v814_v3 = vpop.permute.xlu0 %813 }
 0x5e2   :  { %v878_v42 = vmul.f32 %v814_v3, %v1445_v30  ;;  %v876_v44 = vmul.f32 %v809_v55, %v1430_v47  ;;  %v1041_v30 = vld [vmem:[%s1544_s0] sm:$0xff] }
 0x5f6   :  { %v847_v4 = vpop.permute.xlu1 %846 }
 0x5f7   :  { %v880_v31 = vadd.f32 %v872_v24, %v847_v4 }
 0x5fa   :  { %v852_v6 = vpop.permute.xlu1 %851 }
 0x5fb   :  { %v882_v10 = vadd.f32 %v874_v29, %v852_v6 }
 0x5fd   :  { %v888_v61 = vpack.c.bf16 %v882_v10, %v880_v31 }
 0x63e   :  { %v832_v21 = vpop.permute.xlu0 %831  ;;  %v827_v23 = vpop.permute.xlu1 %826 }
 0x63f   :  { %v883_v25 = vadd.f32 %v875_v7, %v832_v21  ;;  %v881_v26 = vadd.f32 %v873_v36, %v827_v23 }
 0x641   :  { %v889_v13 = vpack.c.bf16 %v883_v25, %v881_v26 }
 0x642   :  { %v842_v38 = vpop.permute.xlu0 %841  ;;  %v837_v9 = vpop.permute.xlu1 %836 }
 0x643   :  { %v887_v41 = vadd.f32 %v879_v37, %v842_v38  ;;  %v885_v27 = vadd.f32 %v877_v35, %v837_v9  ;;  %906 = vmatprep.subr.bf16.mxu1 %v889_v13 }
 0x644   :  { %907 = vmatpush1.bf16.msra.mxu1 %v888_v61 }
 0x645   :  { %v891_v15 = vpack.c.bf16 %v887_v41, %v885_v27 }
 0x646   :  { %v857_v59 = vpop.permute.xlu1 %856 }
 0x647   :  { %908 = vmatprep.subr.bf16.mxu1 %v891_v15  ;;  %v884_v45 = vadd.f32 %v876_v44, %v857_v59  ;;  %v895_v39 = vpop.permute.xlu0 %894 }
 0x64a   :  { %v862_v12 = vpop.permute.xlu1 %861 }
 0x64b   :  { %v886_v8 = vadd.f32 %v878_v42, %v862_v12 }
 0x64d   :  { %v890_v16 = vpack.c.bf16 %v886_v8, %v884_v45 }
 0x64f   :  { %909 = vmatpush1.bf16.msra.mxu1 %v890_v16  ;;  %v900_v5 = vpop.permute.xlu1 %899 }
 0x652   :  { %965 = vmatmul.mubr.msk.bf16.vlgmr.msra.gmra.mrb[0].mxu1 %vm902_vm6, %v46_v63 }
 0x725   :  { %v940_v46 = vpop.f32.mrb[0].mxu1 }
 0x726   :  { %v941_v17 = vadd.f32 %v940_v46, %v895_v39  ;;  %v942_v48 = vpop.f32.mrb[1].mxu1 }
 0x727   :  { %v943_v49 = vadd.f32 %v942_v48, %v895_v39  ;;  %v944_v28 = vpop.f32.mrb[2].mxu1 }
 0x728   :  { %v949_v11 = vadd.f32 %v1041_v30, %v941_v17  ;;  %v945_v47 = vadd.f32 %v944_v28, %v900_v5  ;;  %v946_v51 = vpop.f32.mrb[3].mxu1 }
 0x729   :  { %v950_v14 = vadd.f32 %v1042_v20, %v943_v49  ;;  %v947_v18 = vadd.f32 %v946_v51, %v900_v5 }
 0x72a   :  { %953 = vst [vmem:[%s1549_s5] sm:$0xff] %v949_v11  ;;  %v951_v53 = vadd.f32 %v1043_v43, %v945_v47 }
 0x72b   :  { %954 = vst [vmem:[%s1549_s5 + $0x8] sm:$0xff] %v950_v14  ;;  %v952_v50 = vadd.f32 %v1044_v34, %v947_v18 }
 0x72c   :  { %955 = vst [vmem:[%s1549_s5 + $0x10] sm:$0xff] %v951_v53 }
 0x72d   :  { %956 = vst [vmem:[%s1549_s5 + $0x18] sm:$0xff] %v952_v50 }
 0x72e   :  { %961 = vsyncpa [#allocation3], 1 }

</bundles_post_ra>
